<compile_context>
chip_gen: v6e
topology: v6e:2x2x1
jax: 0.10.0
libtpu: 0.0.40
codegen_flags: <defaults>
</compile_context>

<pallas_src>
import functools

import jax
import jax.numpy as jnp
from jax.experimental import pallas as pl
from jax.experimental.pallas import tpu as pltpu


def mlp_kernel(x_ref,
               w1_ref, b1_ref,
               w2_ref, b2_ref,
               w3_ref, b3_ref,
               w4_ref, b4_ref,
               o_ref, *, matmul_dtype):
    # Cast the f32 x tile to bf16 in-kernel (cheap VPU work hidden under MXU;
    # avoids a wrapper-side cast pass over x in HBM).
    x = x_ref[...].astype(matmul_dtype)

    # Hidden layer 1: Linear + ReLU   (bf16 operands, f32 accumulate)
    h = jnp.dot(x, w1_ref[...], preferred_element_type=jnp.float32)
    h = jnp.maximum(h + b1_ref[...], 0.0)

    # Hidden layer 2: Linear + ReLU
    h = jnp.dot(h.astype(matmul_dtype), w2_ref[...],
                preferred_element_type=jnp.float32)
    h = jnp.maximum(h + b2_ref[...], 0.0)

    # Hidden layer 3: Linear + ReLU
    h = jnp.dot(h.astype(matmul_dtype), w3_ref[...],
                preferred_element_type=jnp.float32)
    h = jnp.maximum(h + b3_ref[...], 0.0)

    # Output layer: Linear (class dim padded to 128; padded bias = -1e30 so the
    # padded logits never affect the max or the normalizer).
    logits = jnp.dot(h.astype(matmul_dtype), w4_ref[...],
                     preferred_element_type=jnp.float32)
    logits = logits + b4_ref[...]

    # LogSoftmax over the class axis, numerically stable, all in f32.
    m = jnp.max(logits, axis=-1, keepdims=True)
    shifted = logits - m
    lse = jnp.log(jnp.sum(jnp.exp(shifted), axis=-1, keepdims=True))
    o_ref[...] = (shifted - lse).astype(o_ref.dtype)


def _round_up(x, m):
    return ((x + m - 1) // m) * m


def simple_mlp_forward(x, params, *, tile_b=512, matmul_dtype=jnp.bfloat16):
    """x: (B, 1, 28, 28) or (B, 784) float32. Returns (B, 10) log-probs.

    tile_b: batch tile (default 512 — multiple of 256 for full MXU rows on
    v6e/v7x; tune per generation). Small batches automatically use a smaller
    tile; single-tile grids are split so v7x's two TensorCores both get work.
    """
    B = x.shape[0]
    x_flat = x.reshape(B, -1).astype(jnp.float32)   # x.view(B, -1); stays f32 in HBM
    in_size = x_flat.shape[1]

    (w1, b1), (w2, b2), (w3, b3), (w4, b4) = params
    hidden = w1.shape[1]
    out_size = w4.shape[1]

    # --- Pad class dim to 128: zero weight columns, large-negative bias. ---
    n_pad = pl.cdiv(out_size, 128) * 128
    if n_pad != out_size:
        w4 = jnp.pad(w4, ((0, 0), (0, n_pad - out_size)))
        b4 = jnp.pad(b4, ((0, 0), (0, n_pad - out_size)),
                     constant_values=-1e30)

    # --- Choose the effective batch tile. ---
    # Small batches: shrink the tile to round_up(B, 16) instead of padding to
    # the full tile (16 keeps bf16 sublane packing legal).
    tile_b_eff = min(tile_b, _round_up(B, 16))
    n_tiles = pl.cdiv(B, tile_b_eff)
    # v7x has 2 TensorCores: a single-tile grid leaves one idle. Split when the
    # tile is large enough to be worth it.
    if n_tiles == 1 and tile_b_eff >= 32:
        tile_b_eff = _round_up(pl.cdiv(tile_b_eff, 2), 16)
        n_tiles = pl.cdiv(B, tile_b_eff)

    b_pad = n_tiles * tile_b_eff
    if b_pad != B:
        x_flat = jnp.pad(x_flat, ((0, b_pad - B), (0, 0)))

    # bf16 matmul weights (cast once at trace time; f32 accumulate in-kernel);
    # biases stay f32. x stays f32 in HBM and is cast per-tile in-kernel.
    w1m, w2m, w3m, w4m = (w.astype(matmul_dtype) for w in (w1, w2, w3, w4))
    b1f, b2f, b3f, b4f = (b.astype(jnp.float32) for b in (b1, b2, b3, b4))

    # Weights/biases resident in VMEM across all batch tiles.
    resident = lambda a: pl.BlockSpec(a.shape, lambda i: (0,) * a.ndim)

    # --- Scoped-VMEM guard (only matters for very large tiles, mainly v5e
    # whose default scoped limit is 16 MiB). ---
    bytes_weights = (sum(w.size for w in (w1m, w2m, w3m, w4m)) * 2
                     + sum(b.size for b in (b1f, b2f, b3f, b4f)) * 4)
    bytes_x = 2 * tile_b_eff * in_size * 4      # double-buffered f32 x tiles
    bytes_out = 2 * tile_b_eff * n_pad * 4      # double-buffered f32 out tiles
    bytes_tmp = 4 * tile_b_eff * hidden * 4     # slack for f32/bf16 activations
    vmem_est = bytes_weights + bytes_x + bytes_out + bytes_tmp
    compiler_kwargs = dict(dimension_semantics=("parallel",))  # megacore sharding
    if vmem_est > 14 * 1024 * 1024:
        compiler_kwargs["vmem_limit_bytes"] = min(int(vmem_est * 1.5),
                                                  48 * 1024 * 1024)

    out_padded = pl.pallas_call(
        functools.partial(mlp_kernel, matmul_dtype=matmul_dtype),
        out_shape=jax.ShapeDtypeStruct((b_pad, n_pad), jnp.float32),
        grid=(n_tiles,),
        in_specs=[
            # x tile: full 784-wide last dim (block dim == array dim is legal),
            # pipelined/double-buffered over the batch grid.
            pl.BlockSpec((tile_b_eff, in_size), lambda i: (i, 0)),
            resident(w1m), resident(b1f),
            resident(w2m), resident(b2f),
            resident(w3m), resident(b3f),
            resident(w4m), resident(b4f),
        ],
        out_specs=pl.BlockSpec((tile_b_eff, n_pad), lambda i: (i, 0)),
        compiler_params=pltpu.CompilerParams(**compiler_kwargs),
    )(x_flat, w1m, b1f, w2m, b2f, w3m, b3f, w4m, b4f)

    # Drop batch padding and padded class columns.
    return out_padded[:B, :out_size]


def reference_forward(x, params, matmul_dtype=jnp.bfloat16):
    """Pure-JAX reference with the same bf16-operand / f32-accumulate math."""
    B = x.shape[0]
    h = x.reshape(B, -1).astype(jnp.float32)
    for idx, (w, b) in enumerate(params):
        h = jnp.dot(h.astype(matmul_dtype), w.astype(matmul_dtype),
                    preferred_element_type=jnp.float32) + b.astype(jnp.float32)
        if idx < len(params) - 1:
            h = jnp.maximum(h, 0.0)
    return jax.nn.log_softmax(h, axis=-1)


def init_params(key, input_size=28 * 28, hidden_layers=(256, 256, 256),
                output_size=10):
    """Deterministic init matching nn.Linear's default (Kaiming-uniform-ish).
    Weights are returned already transposed to (in_features, out_features)."""
    sizes = [input_size, *hidden_layers, output_size]
    params = []
    for i in range(len(sizes) - 1):
        fan_in, fan_out = sizes[i], sizes[i + 1]
        key, kw, kb = jax.random.split(key, 3)
        bound = 1.0 / (fan_in ** 0.5)
        w = jax.random.uniform(kw, (fan_in, fan_out), jnp.float32, -bound, bound)
        b = jax.random.uniform(kb, (1, fan_out), jnp.float32, -bound, bound)
        params.append((w, b))
    return params


if __name__ == "__main__":
    key = jax.random.PRNGKey(0)
    key, kx = jax.random.split(key)

    B = 8
    x = jax.random.normal(kx, (B, 1, 28, 28), dtype=jnp.float32)  # NCHW
    params = init_params(key)

    out = simple_mlp_forward(x, params)
    out = jax.block_until_ready(out)

    # Sanity 1: shape and log-probs summing (in prob space) to ~1.
    probs_sum = jnp.sum(jnp.exp(out), axis=1)
    assert out.shape == (B, 10)
    assert bool(jnp.all(jnp.abs(probs_sum - 1.0) < 1e-4))

    # Sanity 2: matches a pure-JAX reference using the same precision recipe.
    ref = reference_forward(x, params)
    assert bool(jnp.max(jnp.abs(out - ref)) < 1e-2), float(
        jnp.max(jnp.abs(out - ref)))

    # Sanity 3: multi-tile path (B larger than the effective tile) also works.
    key, kx2 = jax.random.split(key)
    B2 = 600
    x2 = jax.random.normal(kx2, (B2, 1, 28, 28), dtype=jnp.float32)
    out2 = jax.block_until_ready(simple_mlp_forward(x2, params))
    ref2 = reference_forward(x2, params)
    assert out2.shape == (B2, 10)
    assert bool(jnp.max(jnp.abs(out2 - ref2)) < 1e-2), float(
        jnp.max(jnp.abs(out2 - ref2)))

    print("KERNEL_OK")
</pallas_src>

<mosaic_0001>
module attributes {stable_mosaic.version = 11 : i64} {
  func.func @mlp_kernel(%arg0: i32, %arg1: memref<16x784xf32, #tpu.memory_space<vmem>>, %arg2: memref<784x256xbf16, #tpu.memory_space<vmem>>, %arg3: memref<1x256xf32, #tpu.memory_space<vmem>>, %arg4: memref<256x256xbf16, #tpu.memory_space<vmem>>, %arg5: memref<1x256xf32, #tpu.memory_space<vmem>>, %arg6: memref<256x256xbf16, #tpu.memory_space<vmem>>, %arg7: memref<1x256xf32, #tpu.memory_space<vmem>>, %arg8: memref<256x128xbf16, #tpu.memory_space<vmem>>, %arg9: memref<1x128xf32, #tpu.memory_space<vmem>>, %arg10: memref<16x128xf32, #tpu.memory_space<vmem>>) attributes {dimension_semantics = [#tpu.dimension_semantics<parallel>], iteration_bounds = array<i64: 1>, scalar_prefetch = 0 : i64, scratch_operands = 0 : i64, tpu.core_type = #tpu.core_type<tc>, window_params = [{transform_indices = @transform_0, window_bounds = array<i64: 16, 784>}, {pipeline_mode = #tpu.pipeline_mode<synchronous>, transform_indices = @transform_1, window_bounds = array<i64: 784, 256>}, {pipeline_mode = #tpu.pipeline_mode<synchronous>, transform_indices = @transform_2, window_bounds = array<i64: 1, 256>}, {pipeline_mode = #tpu.pipeline_mode<synchronous>, transform_indices = @transform_3, window_bounds = array<i64: 256, 256>}, {pipeline_mode = #tpu.pipeline_mode<synchronous>, transform_indices = @transform_4, window_bounds = array<i64: 1, 256>}, {pipeline_mode = #tpu.pipeline_mode<synchronous>, transform_indices = @transform_5, window_bounds = array<i64: 256, 256>}, {pipeline_mode = #tpu.pipeline_mode<synchronous>, transform_indices = @transform_6, window_bounds = array<i64: 1, 256>}, {pipeline_mode = #tpu.pipeline_mode<synchronous>, transform_indices = @transform_7, window_bounds = array<i64: 256, 128>}, {pipeline_mode = #tpu.pipeline_mode<synchronous>, transform_indices = @transform_8, window_bounds = array<i64: 1, 128>}, {transform_indices = @transform_9, window_bounds = array<i64: 16, 128>}]} {
    %c0 = arith.constant 0 : index
    %c0_0 = arith.constant 0 : index
    %0 = vector.load %arg1[%c0, %c0_0] : memref<16x784xf32, #tpu.memory_space<vmem>>, vector<16x784xf32>
    %1 = arith.truncf %0 : vector<16x784xf32> to vector<16x784xbf16>
    %c0_1 = arith.constant 0 : index
    %c0_2 = arith.constant 0 : index
    %2 = vector.load %arg2[%c0_1, %c0_2] : memref<784x256xbf16, #tpu.memory_space<vmem>>, vector<784x256xbf16>
    %cst = arith.constant dense<0.000000e+00> : vector<16x256xf32>
    %3 = tpu.matmul %1, %2, %cst {dimension_numbers = #tpu.dot_dimension_numbers<[1], [0], [0], [1], [0, 0, 1, 1], [], []>} : vector<16x784xbf16>, vector<784x256xbf16>, vector<16x256xf32> -> vector<16x256xf32>
    %c0_3 = arith.constant 0 : index
    %c0_4 = arith.constant 0 : index
    %4 = vector.load %arg3[%c0_3, %c0_4] : memref<1x256xf32, #tpu.memory_space<vmem>>, vector<1x256xf32>
    %5 = vector.broadcast %4 : vector<1x256xf32> to vector<16x256xf32>
    %6 = arith.addf %3, %5 : vector<16x256xf32>
    %cst_5 = arith.constant 0.000000e+00 : f32
    %7 = vector.broadcast %cst_5 : f32 to vector<16x256xf32>
    %8 = arith.maximumf %6, %7 : vector<16x256xf32>
    %9 = arith.truncf %8 : vector<16x256xf32> to vector<16x256xbf16>
    %c0_6 = arith.constant 0 : index
    %c0_7 = arith.constant 0 : index
    %10 = vector.load %arg4[%c0_6, %c0_7] : memref<256x256xbf16, #tpu.memory_space<vmem>>, vector<256x256xbf16>
    %cst_8 = arith.constant dense<0.000000e+00> : vector<16x256xf32>
    %11 = tpu.matmul %9, %10, %cst_8 {dimension_numbers = #tpu.dot_dimension_numbers<[1], [0], [0], [1], [0, 0, 1, 1], [], []>} : vector<16x256xbf16>, vector<256x256xbf16>, vector<16x256xf32> -> vector<16x256xf32>
    %c0_9 = arith.constant 0 : index
    %c0_10 = arith.constant 0 : index
    %12 = vector.load %arg5[%c0_9, %c0_10] : memref<1x256xf32, #tpu.memory_space<vmem>>, vector<1x256xf32>
    %13 = vector.broadcast %12 : vector<1x256xf32> to vector<16x256xf32>
    %14 = arith.addf %11, %13 : vector<16x256xf32>
    %cst_11 = arith.constant 0.000000e+00 : f32
    %15 = vector.broadcast %cst_11 : f32 to vector<16x256xf32>
    %16 = arith.maximumf %14, %15 : vector<16x256xf32>
    %17 = arith.truncf %16 : vector<16x256xf32> to vector<16x256xbf16>
    %c0_12 = arith.constant 0 : index
    %c0_13 = arith.constant 0 : index
    %18 = vector.load %arg6[%c0_12, %c0_13] : memref<256x256xbf16, #tpu.memory_space<vmem>>, vector<256x256xbf16>
    %cst_14 = arith.constant dense<0.000000e+00> : vector<16x256xf32>
    %19 = tpu.matmul %17, %18, %cst_14 {dimension_numbers = #tpu.dot_dimension_numbers<[1], [0], [0], [1], [0, 0, 1, 1], [], []>} : vector<16x256xbf16>, vector<256x256xbf16>, vector<16x256xf32> -> vector<16x256xf32>
    %c0_15 = arith.constant 0 : index
    %c0_16 = arith.constant 0 : index
    %20 = vector.load %arg7[%c0_15, %c0_16] : memref<1x256xf32, #tpu.memory_space<vmem>>, vector<1x256xf32>
    %21 = vector.broadcast %20 : vector<1x256xf32> to vector<16x256xf32>
    %22 = arith.addf %19, %21 : vector<16x256xf32>
    %cst_17 = arith.constant 0.000000e+00 : f32
    %23 = vector.broadcast %cst_17 : f32 to vector<16x256xf32>
    %24 = arith.maximumf %22, %23 : vector<16x256xf32>
    %25 = arith.truncf %24 : vector<16x256xf32> to vector<16x256xbf16>
    %c0_18 = arith.constant 0 : index
    %c0_19 = arith.constant 0 : index
    %26 = vector.load %arg8[%c0_18, %c0_19] : memref<256x128xbf16, #tpu.memory_space<vmem>>, vector<256x128xbf16>
    %cst_20 = arith.constant dense<0.000000e+00> : vector<16x128xf32>
    %27 = tpu.matmul %25, %26, %cst_20 {dimension_numbers = #tpu.dot_dimension_numbers<[1], [0], [0], [1], [0, 0, 1, 1], [], []>} : vector<16x256xbf16>, vector<256x128xbf16>, vector<16x128xf32> -> vector<16x128xf32>
    %c0_21 = arith.constant 0 : index
    %c0_22 = arith.constant 0 : index
    %28 = vector.load %arg9[%c0_21, %c0_22] : memref<1x128xf32, #tpu.memory_space<vmem>>, vector<1x128xf32>
    %29 = vector.broadcast %28 : vector<1x128xf32> to vector<16x128xf32>
    %30 = arith.addf %27, %29 : vector<16x128xf32>
    %cst_23 = arith.constant dense<0xFF800000> : vector<16xf32>
    %31 = vector.multi_reduction <maximumf>, %30, %cst_23 [1] : vector<16x128xf32> to vector<16xf32>
    %32 = vector.shape_cast %31 : vector<16xf32> to vector<16x1xf32>
    %33 = vector.broadcast %32 : vector<16x1xf32> to vector<16x128xf32>
    %34 = arith.subf %30, %33 : vector<16x128xf32>
    %35 = math.exp %34 : vector<16x128xf32>
    %cst_24 = arith.constant dense<0.000000e+00> : vector<16xf32>
    %36 = vector.multi_reduction <add>, %35, %cst_24 [1] : vector<16x128xf32> to vector<16xf32>
    %37 = vector.shape_cast %36 : vector<16xf32> to vector<16x1xf32>
    %38 = math.log %37 : vector<16x1xf32>
    %39 = vector.broadcast %38 : vector<16x1xf32> to vector<16x128xf32>
    %40 = arith.subf %34, %39 : vector<16x128xf32>
    %c0_25 = arith.constant 0 : index
    %c0_26 = arith.constant 0 : index
    %41 = vector.load %arg10[%c0_25, %c0_26] : memref<16x128xf32, #tpu.memory_space<vmem>>, vector<16x128xf32>
    tpu.vector_store %arg10[%c0_25, %c0_26], %40 {strides = array<i32>} : memref<16x128xf32, #tpu.memory_space<vmem>>, vector<16x128xf32>,
    return
  }
  func.func @transform_0(%arg0: i32) -> (i32, i32) {
    %c0_i32 = arith.constant 0 : i32
    %c0_i32_0 = arith.constant 0 : i32
    return %arg0, %c0_i32 : i32, i32
  }
  func.func @transform_1(%arg0: i32) -> (i32, i32) {
    %c0_i32 = arith.constant 0 : i32
    %c0_i32_0 = arith.constant 0 : i32
    %c0_i32_1 = arith.constant 0 : i32
    return %c0_i32, %c0_i32_0 : i32, i32
  }
  func.func @transform_2(%arg0: i32) -> (i32, i32) {
    %c0_i32 = arith.constant 0 : i32
    %c0_i32_0 = arith.constant 0 : i32
    %c0_i32_1 = arith.constant 0 : i32
    return %c0_i32, %c0_i32_0 : i32, i32
  }
  func.func @transform_3(%arg0: i32) -> (i32, i32) {
    %c0_i32 = arith.constant 0 : i32
    %c0_i32_0 = arith.constant 0 : i32
    %c0_i32_1 = arith.constant 0 : i32
    return %c0_i32, %c0_i32_0 : i32, i32
  }
  func.func @transform_4(%arg0: i32) -> (i32, i32) {
    %c0_i32 = arith.constant 0 : i32
    %c0_i32_0 = arith.constant 0 : i32
    %c0_i32_1 = arith.constant 0 : i32
    return %c0_i32, %c0_i32_0 : i32, i32
  }
  func.func @transform_5(%arg0: i32) -> (i32, i32) {
    %c0_i32 = arith.constant 0 : i32
    %c0_i32_0 = arith.constant 0 : i32
    %c0_i32_1 = arith.constant 0 : i32
    return %c0_i32, %c0_i32_0 : i32, i32
  }
  func.func @transform_6(%arg0: i32) -> (i32, i32) {
    %c0_i32 = arith.constant 0 : i32
    %c0_i32_0 = arith.constant 0 : i32
    %c0_i32_1 = arith.constant 0 : i32
    return %c0_i32, %c0_i32_0 : i32, i32
  }
  func.func @transform_7(%arg0: i32) -> (i32, i32) {
    %c0_i32 = arith.constant 0 : i32
    %c0_i32_0 = arith.constant 0 : i32
    %c0_i32_1 = arith.constant 0 : i32
    return %c0_i32, %c0_i32_0 : i32, i32
  }
  func.func @transform_8(%arg0: i32) -> (i32, i32) {
    %c0_i32 = arith.constant 0 : i32
    %c0_i32_0 = arith.constant 0 : i32
    %c0_i32_1 = arith.constant 0 : i32
    return %c0_i32, %c0_i32_0 : i32, i32
  }
  func.func @transform_9(%arg0: i32) -> (i32, i32) {
    %c0_i32 = arith.constant 0 : i32
    %c0_i32_0 = arith.constant 0 : i32
    return %arg0, %c0_i32 : i32, i32
  }
}

</mosaic_0001>

<bundles_post_ra>
// kernel: tpu_custom_call.1
= control target key start
LH: loop header
LB: loop body
LE: loop exit
PB: predicated region body
PF: predicated region fallthrough
CT: control target
= control target key end

     0   :  { %14 = vsyncpa [#allocation3], 0  ;;  %s2353_s0 = inlined_call_operand.hbm [shape: f32[16,784], index: 0, kind: input, shape index: {}]   ;;  %s2354_s1 = inlined_call_operand.hbm [shape: bf16[784,256], index: 1, kind: input, shape index: {}]   ;;  %s2355_s2 = inlined_call_operand.vmem [shape: f32[1,256], index: 2, kind: input, shape index: {}]   ;;  %s2356_s3 = inlined_call_operand.hbm [shape: bf16[256,256], index: 3, kind: input, shape index: {}]   ;;  %s2357_s4 = inlined_call_operand.vmem [shape: f32[1,256], index: 4, kind: input, shape index: {}]   ;;  %s2358_s5 = inlined_call_operand.hbm [shape: bf16[256,256], index: 5, kind: input, shape index: {}]   ;;  %s2359_s6 = inlined_call_operand.vmem [shape: f32[1,256], index: 6, kind: input, shape index: {}]   ;;  %s2360_s7 = inlined_call_operand.hbm [shape: bf16[256,128], index: 7, kind: input, shape index: {}]   ;;  %s2361_s8 = inlined_call_operand.vmem [shape: f32[1,128], index: 8, kind: input, shape index: {}]   ;;  %s2362_s9 = inlined_call_operand.hbm [shape: f32[16,128], index: 9, kind: output, shape index: {}]  }
   0x1   :  { %15 = vsyncpa [#allocation6], 0 }
   0x2   :  { %16 = vsyncpa [#allocation9], 0 }
   0x3   :  { %17 = vsyncpa [#allocation4], 0  ;;  %s2238_s30 = smov [#allocation5]  }
   0x4   :  { %s35_s10 = sshll.u32 %s2238_s30, 4  ;;  %s36_s10 = int_to_ptr.vmem [resolvable:$true] %s35_s10 }
   0x5   :  { %s2118_s11 = scalar_lea.vmem %s36_s10, 12544  ;;  %p2123_p1 = scmp.lt.s32.totalorder %s36_s10, %s36_s10 }
   0x6   :  { %p2119_p0 = scmp.ne.s32.totalorder %s36_s10, %s2118_s11  ;;  %p2124_p2 = scmp.lt.s32.totalorder %s2118_s11, %s2118_s11 }
   0x8   :  { %p2125_p3 = por %p2124_p2, %p2123_p1 }
   0xa   :  { %p2126_p4 = pnand %p2125_p3, %p2119_p0 }
   0xc   :  { %2129 = shalt.err (!%p2126_p4)
}
   0xd   :  { %s2239_s12 = smov 128   ;;  %s2240_s13 = smov 8  }
   0xe   :  { %41 = dma.hbm_to_vmem [thread:$0]  %s2354_s1, 12544, %s36_s10, [#allocation6], %s2239_s12, %s2239_s12, %s2240_s13  }
   0xf   :  { %s2241_s16 = smov [#allocation8]   ;;  %s2242_s18 = smov [#allocation2]  }
  0x10   :  { %s63_s17 = sshll.u32 %s2241_s16, 4  ;;  %s23_s19 = sshll.u32 %s2242_s18, 4  ;;  %s64_s17 = int_to_ptr.vmem [resolvable:$true] %s63_s17  ;;  %s24_s19 = int_to_ptr.vmem [resolvable:$true] %s23_s19 }
  0x11   :  { %s2138_s20 = scalar_lea.vmem %s64_s17, 4096  ;;  %p2143_p6 = scmp.lt.s32.totalorder %s64_s17, %s64_s17 }
  0x12   :  { %p2139_p5 = scmp.ne.s32.totalorder %s64_s17, %s2138_s20  ;;  %p2144_p7 = scmp.lt.s32.totalorder %s2138_s20, %s2138_s20 }
  0x14   :  { %p2145_p8 = por %p2144_p7, %p2143_p6 }
  0x16   :  { %p2146_p9 = pnand %p2145_p8, %p2139_p5 }
  0x18   :  { %2149 = shalt.err (!%p2146_p9)
}
  0x19   :  { %69 = dma.hbm_to_vmem [thread:$0]  %s2358_s5, 4096, %s64_s17, [#allocation9], %s2239_s12, %s2239_s12, %s2240_s13  }
  0x1a   :  { %s2158_s1 = scalar_lea.vmem %s24_s19, 1792  ;;  %p2163_p11 = scmp.lt.s32.totalorder %s24_s19, %s24_s19 }
  0x1b   :  { %p2159_p10 = scmp.ne.s32.totalorder %s24_s19, %s2158_s1  ;;  %p2164_p12 = scmp.lt.s32.totalorder %s2158_s1, %s2158_s1 }
  0x1d   :  { %p2165_p13 = por %p2164_p12, %p2163_p11 }
  0x1f   :  { %p2166_p0 = pnand %p2165_p13, %p2159_p10 }
  0x21   :  { %2169 = shalt.err (!%p2166_p0)
}
  0x22   :  { %s2243_s23 = smov 896   ;;  %s2244_s24 = smov 56  }
  0x23   :  { %29 = dma.hbm_to_vmem [thread:$0]  %s2353_s0, 1792, %s24_s19, [#allocation3], %s2243_s23, %s2243_s23, %s2244_s24  }
  0x24   :  { %s2245_s27 = smov [#allocation7]   ;;  %s2246_s29 = smov [#allocation10]  }
  0x25   :  { %s49_s28 = sshll.u32 %s2245_s27, 4  ;;  %s77_s30 = sshll.u32 %s2246_s29, 4  ;;  %s50_s28 = int_to_ptr.vmem [resolvable:$true] %s49_s28  ;;  %s78_s30 = int_to_ptr.vmem [resolvable:$true] %s77_s30 }
  0x26   :  { %s2178_s5 = scalar_lea.vmem %s50_s28, 4096  ;;  %p2183_p2 = scmp.lt.s32.totalorder %s50_s28, %s50_s28 }
  0x27   :  { %p2179_p1 = scmp.ne.s32.totalorder %s50_s28, %s2178_s5  ;;  %p2184_p3 = scmp.lt.s32.totalorder %s2178_s5, %s2178_s5 }
  0x29   :  { %p2185_p4 = por %p2184_p3, %p2183_p2 }
  0x2b   :  { %p2186_p5 = pnand %p2185_p4, %p2179_p1 }
  0x2d   :  { %2189 = shalt.err (!%p2186_p5)
}
  0x2e   :  { %55 = dma.hbm_to_vmem [thread:$0]  %s2356_s3, 4096, %s50_s28, [#allocation6], %s2239_s12, %s2239_s12, %s2240_s13  }
  0x2f   :  { %s2198_s0 = scalar_lea.vmem %s78_s30, 2048  ;;  %p2203_p7 = scmp.lt.s32.totalorder %s78_s30, %s78_s30 }
  0x30   :  { %p2199_p6 = scmp.ne.s32.totalorder %s78_s30, %s2198_s0  ;;  %p2204_p8 = scmp.lt.s32.totalorder %s2198_s0, %s2198_s0 }
  0x32   :  { %p2205_p9 = por %p2204_p8, %p2203_p7 }
  0x34   :  { %p2206_p10 = pnand %p2205_p9, %p2199_p6 }
  0x36   :  { %2209 = shalt.err (!%p2206_p10)
}
  0x37   :  { %s2247_s14 = smov 64   ;;  %s2248_s15 = smov 4  }
  0x38   :  { %83 = dma.hbm_to_vmem [thread:$0]  %s2360_s7, 2048, %s78_s30, [#allocation9], %s2247_s14, %s2247_s14, %s2248_s15  }
  0x39   :  { %2230 = dma.done.wait [#allocation3], 1792  }
  0x3a   :  { %2231 = vsyncadd [#allocation3], 4294965504 }
  0x3b   :  { %2232 = dma.done.wait [#allocation6], 16640  }
  0x3c   :  { %2233 = vsyncadd [#allocation6], 4294950656 }
  0x3d   :  { %2234 = dma.done.wait [#allocation9], 6144  }
  0x3e   :  { %2235 = vsyncadd [#allocation9], 4294961152  ;;  %v1843_v0 = vld [vmem:[#allocation5 + $0x74] ss:$8 sps:$4 sm:$0xff]   ;;  %v1845_v1 = vld [vmem:[#allocation5 + $0x70] ss:$8 sps:$4 sm:$0xff]  }
  0x3f   :  { %727 = vmatprep.subr.bf16.mxu0 %v1843_v0  ;;  %v1846_v2 = vld [vmem:[#allocation5 + $0x174] ss:$8 sps:$4 sm:$0xff]   ;;  %v1848_v3 = vld [vmem:[#allocation5 + $0x170] ss:$8 sps:$4 sm:$0xff]   ;;  %v1849_v4 = vld [vmem:[#allocation5 + $0x64] ss:$8 sps:$4 sm:$0xff]  }
  0x40   :  { %728 = vmatpush1.bf16.msra.mxu0 %v1845_v1  ;;  %v1851_v5 = vld [vmem:[#allocation5 + $0x60] ss:$8 sps:$4 sm:$0xff]   ;;  %770 = vmatprep.subr.bf16.mxu1 %v1846_v2  ;;  %v1852_v6 = vld [vmem:[#allocation5 + $0x164] ss:$8 sps:$4 sm:$0xff]   ;;  %v1855_v8 = vld [vmem:[#allocation5 + $0x54] ss:$8 sps:$4 sm:$0xff]  }
  0x41   :  { %771 = vmatpush1.bf16.msra.mxu1 %v1848_v3  ;;  %729 = vmatprep.subr.bf16.mxu0 %v1849_v4  ;;  %v1854_v7 = vld [vmem:[#allocation5 + $0x160] ss:$8 sps:$4 sm:$0xff]   ;;  %v1857_v9 = vld [vmem:[#allocation5 + $0x50] ss:$8 sps:$4 sm:$0xff]   ;;  %v1858_v10 = vld [vmem:[#allocation5 + $0x154] ss:$8 sps:$4 sm:$0xff]  }
  0x42   :  { %772 = vmatprep.subr.bf16.mxu1 %v1852_v6  ;;  %v1861_v11 = vld [vmem:[#allocation5 + $0x44] ss:$8 sps:$4 sm:$0xff]   ;;  %v1860_v12 = vld [vmem:[#allocation5 + $0x150] ss:$8 sps:$4 sm:$0xff]   ;;  %v1863_v14 = vld [vmem:[#allocation5 + $0x40] ss:$8 sps:$4 sm:$0xff]  }
  0x43   :  { %v1864_v13 = vld [vmem:[#allocation5 + $0x144] ss:$8 sps:$4 sm:$0xff]   ;;  %v1867_v15 = vld [vmem:[#allocation5 + $0x34] ss:$8 sps:$4 sm:$0xff]   ;;  %v1866_v16 = vld [vmem:[#allocation5 + $0x140] ss:$8 sps:$4 sm:$0xff]  }
  0x44   :  { %730 = vmatpush1.bf16.msra.mxu0 %v1851_v5  ;;  %v1870_v17 = vld [vmem:[#allocation5 + $0x134] ss:$8 sps:$4 sm:$0xff]   ;;  %v1869_v18 = vld [vmem:[#allocation5 + $0x30] ss:$8 sps:$4 sm:$0xff]   ;;  %v1873_v19 = vld [vmem:[#allocation5 + $0x24] ss:$8 sps:$4 sm:$0xff]  }
  0x45   :  { %731 = vmatprep.subr.bf16.mxu0 %v1855_v8  ;;  %773 = vmatpush1.bf16.msra.mxu1 %v1854_v7  ;;  %v1872_v20 = vld [vmem:[#allocation5 + $0x130] ss:$8 sps:$4 sm:$0xff]   ;;  %v1876_v21 = vld [vmem:[#allocation5 + $0x124] ss:$8 sps:$4 sm:$0xff]   ;;  %v1875_v22 = vld [vmem:[#allocation5 + $0x20] ss:$8 sps:$4 sm:$0xff]  }
  0x46   :  { %774 = vmatprep.subr.bf16.mxu1 %v1858_v10  ;;  %v1879_v23 = vld [vmem:[#allocation5 + $0x14] ss:$8 sps:$4 sm:$0xff]   ;;  %v1878_v24 = vld [vmem:[#allocation5 + $0x120] ss:$8 sps:$4 sm:$0xff]   ;;  %v1881_v26 = vld [vmem:[#allocation5 + $0x10] ss:$8 sps:$4 sm:$0xff]  }
  0x47   :  { %v1882_v25 = vld [vmem:[#allocation5 + $0x114] ss:$8 sps:$4 sm:$0xff]   ;;  %v1885_v27 = vld [vmem:[#allocation5 + $0x4] ss:$8 sps:$4 sm:$0xff]   ;;  %v1884_v28 = vld [vmem:[#allocation5 + $0x110] ss:$8 sps:$4 sm:$0xff]  }
  0x48   :  { %732 = vmatpush1.bf16.msra.mxu0 %v1857_v9  ;;  %v1888_v29 = vld [vmem:[#allocation5 + $0x104] ss:$8 sps:$4 sm:$0xff]   ;;  %v1887_v30 = vld [vmem:[#allocation5] ss:$8 sps:$4 sm:$0xff]   ;;  %v1891_v31 = vld [vmem:[#allocation5 + $0xf4] ss:$8 sps:$4 sm:$0xff]  }
  0x49   :  { %733 = vmatprep.subr.bf16.mxu0 %v1861_v11  ;;  %775 = vmatpush1.bf16.msra.mxu1 %v1860_v12  ;;  %v1890_v32 = vld [vmem:[#allocation5 + $0x100] ss:$8 sps:$4 sm:$0xff]   ;;  %v1894_v33 = vld [vmem:[#allocation5 + $0x1f4] ss:$8 sps:$4 sm:$0xff]   ;;  %v1893_v34 = vld [vmem:[#allocation5 + $0xf0] ss:$8 sps:$4 sm:$0xff]  }
  0x4a   :  { %776 = vmatprep.subr.bf16.mxu1 %v1864_v13  ;;  %v1897_v35 = vld [vmem:[#allocation5 + $0xe4] ss:$8 sps:$4 sm:$0xff]   ;;  %v1896_v36 = vld [vmem:[#allocation5 + $0x1f0] ss:$8 sps:$4 sm:$0xff]   ;;  %v1899_v38 = vld [vmem:[#allocation5 + $0xe0] ss:$8 sps:$4 sm:$0xff]  }
  0x4b   :  { %v1900_v37 = vld [vmem:[#allocation5 + $0x1e4] ss:$8 sps:$4 sm:$0xff]   ;;  %v1903_v39 = vld [vmem:[#allocation5 + $0xd4] ss:$8 sps:$4 sm:$0xff]   ;;  %v1902_v40 = vld [vmem:[#allocation5 + $0x1e0] ss:$8 sps:$4 sm:$0xff]  }
  0x4c   :  { %734 = vmatpush1.bf16.msra.mxu0 %v1863_v14  ;;  %v1906_v41 = vld [vmem:[#allocation5 + $0x1d4] ss:$8 sps:$4 sm:$0xff]   ;;  %v1905_v42 = vld [vmem:[#allocation5 + $0xd0] ss:$8 sps:$4 sm:$0xff]   ;;  %v1909_v43 = vld [vmem:[#allocation5 + $0xc4] ss:$8 sps:$4 sm:$0xff]  }
  0x4d   :  { %735 = vmatprep.subr.bf16.mxu0 %v1867_v15  ;;  %777 = vmatpush1.bf16.msra.mxu1 %v1866_v16  ;;  %v1908_v44 = vld [vmem:[#allocation5 + $0x1d0] ss:$8 sps:$4 sm:$0xff]   ;;  %v1912_v45 = vld [vmem:[#allocation5 + $0x1c4] ss:$8 sps:$4 sm:$0xff]   ;;  %v1911_v48 = vld [vmem:[#allocation5 + $0xc0] ss:$8 sps:$4 sm:$0xff]  }
  0x4e   :  { %778 = vmatprep.subr.bf16.mxu1 %v1870_v17  ;;  %v103_v46 = vld [vmem:[#allocation2 + $0x8] sm:$0xff]  ;;  %v110_v47 = vld [vmem:[#allocation2 + $0x40] sm:$0xff]  ;;  %v1914_v51 = vld [vmem:[#allocation5 + $0x1c0] ss:$8 sps:$4 sm:$0xff]   ;;  %vm723_vm0 = vcmask 130048  }
  0x4f   :  { %v117_v49 = vpack.c.bf16 %v110_v47, %v103_v46  ;;  %v1915_v50 = vld [vmem:[#allocation5 + $0xb4] ss:$8 sps:$4 sm:$0xff]   ;;  %v105_v52 = vld [vmem:[#allocation2 + $0x18] sm:$0xff]  ;;  %v112_v53 = vld [vmem:[#allocation2 + $0x50] sm:$0xff] }
  0x50   :  { %736 = vmatpush1.bf16.msra.mxu0 %v1869_v18  ;;  %v1918_v54 = vld [vmem:[#allocation5 + $0x1b4] ss:$8 sps:$4 sm:$0xff]   ;;  %v119_v55 = vpack.c.bf16 %v112_v53, %v105_v52  ;;  %v1917_v56 = vld [vmem:[#allocation5 + $0xb0] ss:$8 sps:$4 sm:$0xff]   ;;  %v1921_v57 = vld [vmem:[#allocation5 + $0xa4] ss:$8 sps:$4 sm:$0xff]  }
  0x51   :  { %737 = vmatprep.subr.bf16.mxu0 %v1873_v19  ;;  %779 = vmatpush1.bf16.msra.mxu1 %v1872_v20  ;;  %v1920_v58 = vld [vmem:[#allocation5 + $0x1b0] ss:$8 sps:$4 sm:$0xff]   ;;  %v1924_v59 = vld [vmem:[#allocation5 + $0x1a4] ss:$8 sps:$4 sm:$0xff]   ;;  %v1923_v60 = vld [vmem:[#allocation5 + $0xa0] ss:$8 sps:$4 sm:$0xff]  }
  0x52   :  { %780 = vmatprep.subr.bf16.mxu1 %v1876_v21  ;;  %759 = vmatprep.mubr.bf16.mxu0 %v117_v49  ;;  %v1927_v61 = vld [vmem:[#allocation5 + $0x94] ss:$8 sps:$4 sm:$0xff]   ;;  %v1926_v62 = vld [vmem:[#allocation5 + $0x1a0] ss:$8 sps:$4 sm:$0xff]   ;;  %v1929_v0 = vld [vmem:[#allocation5 + $0x90] ss:$8 sps:$4 sm:$0xff]  }
  0x53   :  { %802 = vmatprep.mubr.bf16.mxu1 %v119_v55  ;;  %v1930_v63 = vld [vmem:[#allocation5 + $0x194] ss:$8 sps:$4 sm:$0xff]   ;;  %v1932_v1 = vld [vmem:[#allocation5 + $0x190] ss:$8 sps:$4 sm:$0xff]   ;;  %v1933_v2 = vld [vmem:[#allocation5 + $0x84] ss:$8 sps:$4 sm:$0xff]  }
  0x54   :  { %738 = vmatpush1.bf16.msra.mxu0 %v1875_v22  ;;  %v1935_v3 = vld [vmem:[#allocation5 + $0x80] ss:$8 sps:$4 sm:$0xff]   ;;  %v1936_v4 = vld [vmem:[#allocation5 + $0x184] ss:$8 sps:$4 sm:$0xff]   ;;  %v102_v5 = vld [vmem:[#allocation2] sm:$0xff]  ;;  %v2249_v21 = vmov 0  }
  0x55   :  { %739 = vmatprep.subr.bf16.mxu0 %v1879_v23  ;;  %781 = vmatpush1.bf16.msra.mxu1 %v1878_v24  ;;  %v1938_v6 = vld [vmem:[#allocation5 + $0x180] ss:$8 sps:$4 sm:$0xff]   ;;  %v1941_v8 = vld [vmem:[#allocation5 + $0x274] ss:$8 sps:$4 sm:$0xff]   ;;  %v1939_v12 = vld [vmem:[#allocation5 + $0x270] ss:$8 sps:$4 sm:$0xff]  }
  0x56   :  { %782 = vmatprep.subr.bf16.mxu1 %v1882_v25  ;;  %v109_v7 = vld [vmem:[#allocation2 + $0x38] sm:$0xff]  ;;  %v104_v9 = vld [vmem:[#allocation2 + $0x10] sm:$0xff]  ;;  %v111_v10 = vld [vmem:[#allocation2 + $0x48] sm:$0xff] }
  0x57   :  { %v116_v11 = vpack.c.bf16 %v109_v7, %v102_v5  ;;  %v118_v13 = vpack.c.bf16 %v111_v10, %v104_v9  ;;  %v1944_v14 = vld [vmem:[#allocation5 + $0x264] ss:$8 sps:$4 sm:$0xff]   ;;  %v1984_v15 = vld [vmem:[#allocation5 + $0x300] ss:$8 sps:$4 sm:$0xff]   ;;  %v1947_v18 = vld [vmem:[#allocation5 + $0x254] ss:$8 sps:$4 sm:$0xff]  }
  0x58   :  { %740 = vmatpush1.bf16.msra.mxu0 %v1881_v26  ;;  %v1986_v16 = vld [vmem:[#allocation5 + $0x304] ss:$8 sps:$4 sm:$0xff]   ;;  %v1942_v17 = vld [vmem:[#allocation5 + $0x260] ss:$8 sps:$4 sm:$0xff]   ;;  %v107_v19 = vld [vmem:[#allocation2 + $0x28] sm:$0xff] }
  0x59   :  { %741 = vmatprep.subr.bf16.mxu0 %v1885_v27  ;;  %783 = vmatpush1.bf16.msra.mxu1 %v1884_v28  ;;  %v1945_v20 = vld [vmem:[#allocation5 + $0x250] ss:$8 sps:$4 sm:$0xff]   ;;  %v108_v22 = vld [vmem:[#allocation2 + $0x30] sm:$0xff]  ;;  %v1983_v49 = vld [vmem:[#allocation5 + $0x294] ss:$8 sps:$4 sm:$0xff]  }
  0x5a   :  { %784 = vmatprep.subr.bf16.mxu1 %v1888_v29  ;;  %v115_v23 = vld [vmem:[#allocation2 + $0x68] sm:$0xff]  ;;  %v114_v24 = vld [vmem:[#allocation2 + $0x60] sm:$0xff]  ;;  %v1950_v25 = vld [vmem:[#allocation5 + $0x244] ss:$8 sps:$4 sm:$0xff]  }
  0x5b   :  { %v121_v26 = vpack.c.bf16 %v114_v24, %v107_v19  ;;  %v122_v27 = vpack.c.bf16 %v115_v23, %v108_v22  ;;  %v1948_v28 = vld [vmem:[#allocation5 + $0x240] ss:$8 sps:$4 sm:$0xff]   ;;  %v1953_v29 = vld [vmem:[#allocation5 + $0x234] ss:$8 sps:$4 sm:$0xff]   ;;  %v1975_v46 = vld [vmem:[#allocation5 + $0x2b0] ss:$8 sps:$4 sm:$0xff]  }
  0x5c   :  { %742 = vmatpush1.bf16.msra.mxu0 %v1887_v30  ;;  %v1951_v30 = vld [vmem:[#allocation5 + $0x230] ss:$8 sps:$4 sm:$0xff]   ;;  %v1980_v47 = vld [vmem:[#allocation5 + $0x2a4] ss:$8 sps:$4 sm:$0xff]   ;;  %v1987_v52 = vld [vmem:[#allocation5 + $0x280] ss:$8 sps:$4 sm:$0xff]  }
  0x5d   :  { %743 = vmatprep.subr.bf16.mxu0 %v1891_v31  ;;  %785 = vmatpush1.bf16.msra.mxu1 %v1890_v32  ;;  %v1956_v31 = vld [vmem:[#allocation5 + $0x224] ss:$8 sps:$4 sm:$0xff]   ;;  %v1954_v32 = vld [vmem:[#allocation5 + $0x220] ss:$8 sps:$4 sm:$0xff]   ;;  %v106_v53 = vld [vmem:[#allocation2 + $0x20] sm:$0xff] }
  0x5e   :  { %786 = vmatprep.subr.bf16.mxu1 %v1894_v33  ;;  %v1959_v33 = vld [vmem:[#allocation5 + $0x214] ss:$8 sps:$4 sm:$0xff]   ;;  %v2008_v5 = vld [vmem:[#allocation7 + $0x10] ss:$8 sps:$4 sm:$0xff]   ;;  %v2011_v7 = vld [vmem:[#allocation7] ss:$8 sps:$4 sm:$0xff]  }
  0x5f   :  { %v2014_v9 = vld [vmem:[#allocation7 + $0xf0] ss:$8 sps:$4 sm:$0xff]   ;;  %v2019_v10 = vld [vmem:[#allocation7 + $0xe4] ss:$8 sps:$4 sm:$0xff]   ;;  %v2029_v19 = vld [vmem:[#allocation7 + $0xa0] ss:$8 sps:$4 sm:$0xff]  }
  0x60   :  { %744 = vmatpush2.bf16.msra.mxu0 %v1893_v34  ;;  %v1957_v34 = vld [vmem:[#allocation5 + $0x210] ss:$8 sps:$4 sm:$0xff]   ;;  %v2037_v22 = vld [vmem:[#allocation7 + $0x84] ss:$8 sps:$4 sm:$0xff]   ;;  %v2038_v24 = vld [vmem:[#allocation8 + $0x70] ss:$8 sps:$4 sm:$0xff]  }
  0x61   :  { %745 = vmatprep.subr.bf16.mxu0 %v1897_v35  ;;  %787 = vmatpush2.bf16.msra.mxu1 %v1896_v36  ;;  %v1962_v35 = vld [vmem:[#allocation5 + $0x204] ss:$8 sps:$4 sm:$0xff]   ;;  %v1960_v36 = vld [vmem:[#allocation5 + $0x200] ss:$8 sps:$4 sm:$0xff]   ;;  %v2035_v23 = vld [vmem:[#allocation7 + $0x80] ss:$8 sps:$4 sm:$0xff]  }
  0x62   :  { %788 = vmatprep.subr.bf16.mxu1 %v1900_v37  ;;  %v1965_v37 = vld [vmem:[#allocation5 + $0x2f4] ss:$8 sps:$4 sm:$0xff]  }
  0x64   :  { %746 = vmatpush2.bf16.msra.mxu0 %v1899_v38  ;;  %v1963_v38 = vld [vmem:[#allocation5 + $0x2f0] ss:$8 sps:$4 sm:$0xff]  }
  0x65   :  { %747 = vmatprep.subr.bf16.mxu0 %v1903_v39  ;;  %789 = vmatpush2.bf16.msra.mxu1 %v1902_v40  ;;  %v1968_v39 = vld [vmem:[#allocation5 + $0x2e4] ss:$8 sps:$4 sm:$0xff]   ;;  %v1966_v40 = vld [vmem:[#allocation5 + $0x2e0] ss:$8 sps:$4 sm:$0xff]  }
  0x66   :  { %790 = vmatprep.subr.bf16.mxu1 %v1906_v41  ;;  %v1971_v41 = vld [vmem:[#allocation5 + $0x2d4] ss:$8 sps:$4 sm:$0xff]  }
  0x68   :  { %748 = vmatpush2.bf16.msra.mxu0 %v1905_v42  ;;  %v1969_v42 = vld [vmem:[#allocation5 + $0x2d0] ss:$8 sps:$4 sm:$0xff]  }
  0x69   :  { %749 = vmatprep.subr.bf16.mxu0 %v1909_v43  ;;  %791 = vmatpush2.bf16.msra.mxu1 %v1908_v44  ;;  %v1974_v43 = vld [vmem:[#allocation5 + $0x2c4] ss:$8 sps:$4 sm:$0xff]   ;;  %v1972_v44 = vld [vmem:[#allocation5 + $0x2c0] ss:$8 sps:$4 sm:$0xff]  }
  0x6a   :  { %792 = vmatprep.subr.bf16.mxu1 %v1912_v45  ;;  %v1977_v45 = vld [vmem:[#allocation5 + $0x2b4] ss:$8 sps:$4 sm:$0xff]  }
  0x6c   :  { %750 = vmatpush2.bf16.msra.mxu0 %v1911_v48  ;;  %v1978_v48 = vld [vmem:[#allocation5 + $0x2a0] ss:$8 sps:$4 sm:$0xff]  }
  0x6d   :  { %751 = vmatprep.subr.bf16.mxu0 %v1915_v50  ;;  %793 = vmatpush2.bf16.msra.mxu1 %v1914_v51  ;;  %v1981_v50 = vld [vmem:[#allocation5 + $0x290] ss:$8 sps:$4 sm:$0xff]   ;;  %v1989_v51 = vld [vmem:[#allocation5 + $0x284] ss:$8 sps:$4 sm:$0xff]  }
  0x6e   :  { %794 = vmatprep.subr.bf16.mxu1 %v1918_v54  ;;  %v113_v54 = vld [vmem:[#allocation2 + $0x58] sm:$0xff] }
  0x6f   :  { %v120_v55 = vpack.c.bf16 %v113_v54, %v106_v53 }
  0x70   :  { %752 = vmatpush2.bf16.msra.mxu0 %v1917_v56  ;;  %v1990_v56 = vld [vmem:[#allocation7 + $0x70] ss:$8 sps:$4 sm:$0xff]  }
  0x71   :  { %753 = vmatprep.subr.bf16.mxu0 %v1921_v57  ;;  %795 = vmatpush2.bf16.msra.mxu1 %v1920_v58  ;;  %v1992_v57 = vld [vmem:[#allocation7 + $0x74] ss:$8 sps:$4 sm:$0xff]   ;;  %v1995_v58 = vld [vmem:[#allocation7 + $0x64] ss:$8 sps:$4 sm:$0xff]  }
  0x72   :  { %796 = vmatprep.subr.bf16.mxu1 %v1924_v59  ;;  %v1993_v59 = vld [vmem:[#allocation7 + $0x60] ss:$8 sps:$4 sm:$0xff]  }
  0x74   :  { %754 = vmatpush2.bf16.msra.mxu0 %v1923_v60  ;;  %v1998_v60 = vld [vmem:[#allocation7 + $0x54] ss:$8 sps:$4 sm:$0xff]  }
  0x75   :  { %755 = vmatprep.subr.bf16.mxu0 %v1927_v61  ;;  %797 = vmatpush2.bf16.msra.mxu1 %v1926_v62  ;;  %v1996_v61 = vld [vmem:[#allocation7 + $0x50] ss:$8 sps:$4 sm:$0xff]   ;;  %v2001_v62 = vld [vmem:[#allocation7 + $0x44] ss:$8 sps:$4 sm:$0xff]  }
  0x76   :  { %798 = vmatprep.subr.bf16.mxu1 %v1930_v63  ;;  %v1999_v63 = vld [vmem:[#allocation7 + $0x40] ss:$8 sps:$4 sm:$0xff]  }
  0x78   :  { %756 = vmatpush2.bf16.msra.mxu0 %v1929_v0  ;;  %v2004_v0 = vld [vmem:[#allocation7 + $0x34] ss:$8 sps:$4 sm:$0xff]  }
  0x79   :  { %757 = vmatprep.subr.bf16.mxu0 %v1933_v2  ;;  %799 = vmatpush2.bf16.msra.mxu1 %v1932_v1  ;;  %v2002_v1 = vld [vmem:[#allocation7 + $0x30] ss:$8 sps:$4 sm:$0xff]   ;;  %v2007_v2 = vld [vmem:[#allocation7 + $0x24] ss:$8 sps:$4 sm:$0xff]  }
  0x7a   :  { %800 = vmatprep.subr.bf16.mxu1 %v1936_v4  ;;  %v2010_v4 = vld [vmem:[#allocation7 + $0x14] ss:$8 sps:$4 sm:$0xff]  }
  0x7c   :  { %758 = vmatpush2.bf16.msra.mxu0 %v1935_v3  ;;  %v2005_v3 = vld [vmem:[#allocation7 + $0x20] ss:$8 sps:$4 sm:$0xff]  }
  0x7d   :  { %813 = vmatprep.subr.bf16.mxu0 %v1941_v8  ;;  %801 = vmatpush2.bf16.msra.mxu1 %v1938_v6  ;;  %v2013_v6 = vld [vmem:[#allocation7 + $0x4] ss:$8 sps:$4 sm:$0xff]   ;;  %v2016_v8 = vld [vmem:[#allocation7 + $0xf4] ss:$8 sps:$4 sm:$0xff]  }
  0x7e   :  { %870 = vmatprep.subr.bf16.mxu1 %v1986_v16  ;;  %v2028_v16 = vld [vmem:[#allocation7 + $0xb4] ss:$8 sps:$4 sm:$0xff]  }
  0x7f   :  { %760 = vmatmul.mubr.bf16.vlgmr.msra.gmra.mxu0 %v116_v11  ;;  %v2017_v11 = vld [vmem:[#allocation7 + $0xe0] ss:$8 sps:$4 sm:$0xff]  }
  0x80   :  { %814 = vmatpush1.bf16.msra.mxu0 %v1939_v12  ;;  %803 = vmatmul.mubr.bf16.vlgmr.msra.gmra.mxu1 %v118_v13  ;;  %v2022_v12 = vld [vmem:[#allocation7 + $0xd4] ss:$8 sps:$4 sm:$0xff]   ;;  %v2020_v13 = vld [vmem:[#allocation7 + $0xd0] ss:$8 sps:$4 sm:$0xff]  }
  0x81   :  { %815 = vmatprep.subr.bf16.mxu0 %v1944_v14  ;;  %888 = vmatprep.mubr.bf16.mxu1 %v2249_v21  ;;  %v2025_v14 = vld [vmem:[#allocation7 + $0xc4] ss:$8 sps:$4 sm:$0xff]   ;;  %v2032_v21 = vld [vmem:[#allocation7 + $0x90] ss:$8 sps:$4 sm:$0xff]  }
  0x82   :  { %871 = vmatpush1.bf16.msra.mxu1 %v1984_v15  ;;  %845 = vmatprep.mubr.bf16.mxu0 %v121_v26  ;;  %v2023_v15 = vld [vmem:[#allocation7 + $0xc0] ss:$8 sps:$4 sm:$0xff]   ;;  %v2043_v26 = vld [vmem:[#allocation8 + $0x64] ss:$8 sps:$4 sm:$0xff]  }
  0x83   :  { %1109 = vmatprep.subr.bf16.mxu1 %v1992_v57 }
  0x84   :  { %816 = vmatpush1.bf16.msra.mxu0 %v1942_v17  ;;  %v2026_v17 = vld [vmem:[#allocation7 + $0xb0] ss:$8 sps:$4 sm:$0xff]  }
  0x85   :  { %817 = vmatprep.subr.bf16.mxu0 %v1947_v18  ;;  %v2031_v18 = vld [vmem:[#allocation7 + $0xa4] ss:$8 sps:$4 sm:$0xff]  }
  0x88   :  { %818 = vmatpush1.bf16.msra.mxu0 %v1945_v20  ;;  %1726 = vmatmul.mubr.msk.bf16.vlgmr.msra.gmra.mxu1 %vm723_vm0, %v122_v27  ;;  %v2034_v20 = vld [vmem:[#allocation7 + $0x94] ss:$8 sps:$4 sm:$0xff]   ;;  %v2041_v27 = vld [vmem:[#allocation8 + $0x60] ss:$8 sps:$4 sm:$0xff]  }
  0x89   :  { %819 = vmatprep.subr.bf16.mxu0 %v1950_v25  ;;  %1110 = vmatpush1.bf16.msra.mxu1 %v1990_v56  ;;  %v2040_v25 = vld [vmem:[#allocation8 + $0x74] ss:$8 sps:$4 sm:$0xff]   ;;  %v221_v56 = vld [vmem:[%s2355_s2] sm:$0x3] }
  0x8a   :  { %1111 = vmatprep.subr.bf16.mxu1 %v1995_v58 }
  0x8c   :  { %820 = vmatpush1.bf16.msra.mxu0 %v1948_v28  ;;  %v2046_v28 = vld [vmem:[#allocation8 + $0x54] ss:$8 sps:$4 sm:$0xff]  }
  0x8d   :  { %821 = vmatprep.subr.bf16.mxu0 %v1953_v29  ;;  %1112 = vmatpush1.bf16.msra.mxu1 %v1993_v59  ;;  %v2044_v29 = vld [vmem:[#allocation8 + $0x50] ss:$8 sps:$4 sm:$0xff]  }
  0x8e   :  { %1113 = vmatprep.subr.bf16.mxu1 %v1998_v60 }
  0x90   :  { %822 = vmatpush1.bf16.msra.mxu0 %v1951_v30  ;;  %v2049_v30 = vld [vmem:[#allocation8 + $0x44] ss:$8 sps:$4 sm:$0xff]  }
  0x91   :  { %823 = vmatprep.subr.bf16.mxu0 %v1956_v31  ;;  %1114 = vmatpush1.bf16.msra.mxu1 %v1996_v61  ;;  %v2047_v31 = vld [vmem:[#allocation8 + $0x40] ss:$8 sps:$4 sm:$0xff]  }
  0x92   :  { %1115 = vmatprep.subr.bf16.mxu1 %v2001_v62 }
  0x94   :  { %824 = vmatpush1.bf16.msra.mxu0 %v1954_v32  ;;  %v2052_v32 = vld [vmem:[#allocation8 + $0x34] ss:$8 sps:$4 sm:$0xff]  }
  0x95   :  { %825 = vmatprep.subr.bf16.mxu0 %v1959_v33  ;;  %1116 = vmatpush1.bf16.msra.mxu1 %v1999_v63  ;;  %v2050_v33 = vld [vmem:[#allocation8 + $0x30] ss:$8 sps:$4 sm:$0xff]  }
  0x96   :  { %1117 = vmatprep.subr.bf16.mxu1 %v2004_v0 }
  0x98   :  { %826 = vmatpush1.bf16.msra.mxu0 %v1957_v34  ;;  %v2055_v34 = vld [vmem:[#allocation8 + $0x24] ss:$8 sps:$4 sm:$0xff]  }
  0x99   :  { %827 = vmatprep.subr.bf16.mxu0 %v1962_v35  ;;  %1118 = vmatpush1.bf16.msra.mxu1 %v2002_v1  ;;  %v2053_v35 = vld [vmem:[#allocation8 + $0x20] ss:$8 sps:$4 sm:$0xff]  }
  0x9a   :  { %1119 = vmatprep.subr.bf16.mxu1 %v2007_v2 }
  0x9c   :  { %828 = vmatpush1.bf16.msra.mxu0 %v1960_v36  ;;  %v2058_v36 = vld [vmem:[#allocation8 + $0x14] ss:$8 sps:$4 sm:$0xff]  }
  0x9d   :  { %829 = vmatprep.subr.bf16.mxu0 %v1965_v37  ;;  %1120 = vmatpush1.bf16.msra.mxu1 %v2005_v3  ;;  %v2056_v37 = vld [vmem:[#allocation8 + $0x10] ss:$8 sps:$4 sm:$0xff]  }
  0x9e   :  { %1121 = vmatprep.subr.bf16.mxu1 %v2010_v4 }
  0xa0   :  { %830 = vmatpush2.bf16.msra.mxu0 %v1963_v38  ;;  %v2061_v38 = vld [vmem:[#allocation8 + $0x4] ss:$8 sps:$4 sm:$0xff]  }
  0xa1   :  { %831 = vmatprep.subr.bf16.mxu0 %v1968_v39  ;;  %1122 = vmatpush1.bf16.msra.mxu1 %v2008_v5  ;;  %v2059_v39 = vld [vmem:[#allocation8] ss:$8 sps:$4 sm:$0xff]  }
  0xa2   :  { %1123 = vmatprep.subr.bf16.mxu1 %v2013_v6 }
  0xa4   :  { %832 = vmatpush2.bf16.msra.mxu0 %v1966_v40  ;;  %v2064_v40 = vld [vmem:[#allocation8 + $0xf4] ss:$8 sps:$4 sm:$0xff]  }
  0xa5   :  { %833 = vmatprep.subr.bf16.mxu0 %v1971_v41  ;;  %1124 = vmatpush1.bf16.msra.mxu1 %v2011_v7  ;;  %v2062_v41 = vld [vmem:[#allocation8 + $0xf0] ss:$8 sps:$4 sm:$0xff]  }
  0xa6   :  { %1125 = vmatprep.subr.bf16.mxu1 %v2016_v8 }
  0xa8   :  { %834 = vmatpush2.bf16.msra.mxu0 %v1969_v42  ;;  %v2067_v42 = vld [vmem:[#allocation8 + $0xe4] ss:$8 sps:$4 sm:$0xff]  }
  0xa9   :  { %835 = vmatprep.subr.bf16.mxu0 %v1974_v43  ;;  %1126 = vmatpush2.bf16.msra.mxu1 %v2014_v9  ;;  %v2065_v43 = vld [vmem:[#allocation8 + $0xe0] ss:$8 sps:$4 sm:$0xff]  }
  0xaa   :  { %1127 = vmatprep.subr.bf16.mxu1 %v2019_v10 }
  0xac   :  { %836 = vmatpush2.bf16.msra.mxu0 %v1972_v44  ;;  %v2070_v44 = vld [vmem:[#allocation8 + $0xd4] ss:$8 sps:$4 sm:$0xff]  }
  0xad   :  { %837 = vmatprep.subr.bf16.mxu0 %v1977_v45  ;;  %1128 = vmatpush2.bf16.msra.mxu1 %v2017_v11  ;;  %v2068_v45 = vld [vmem:[#allocation8 + $0xd0] ss:$8 sps:$4 sm:$0xff]  }
  0xae   :  { %1129 = vmatprep.subr.bf16.mxu1 %v2022_v12 }
  0xb0   :  { %838 = vmatpush2.bf16.msra.mxu0 %v1975_v46  ;;  %v2073_v46 = vld [vmem:[#allocation8 + $0xc4] ss:$8 sps:$4 sm:$0xff]  }
  0xb1   :  { %839 = vmatprep.subr.bf16.mxu0 %v1980_v47  ;;  %1130 = vmatpush2.bf16.msra.mxu1 %v2020_v13  ;;  %v2071_v47 = vld [vmem:[#allocation8 + $0xc0] ss:$8 sps:$4 sm:$0xff]  }
  0xb2   :  { %1131 = vmatprep.subr.bf16.mxu1 %v2025_v14 }
  0xb4   :  { %840 = vmatpush2.bf16.msra.mxu0 %v1978_v48  ;;  %v2076_v48 = vld [vmem:[#allocation8 + $0xb4] ss:$8 sps:$4 sm:$0xff]  }
  0xb5   :  { %841 = vmatprep.subr.bf16.mxu0 %v1983_v49  ;;  %1132 = vmatpush2.bf16.msra.mxu1 %v2023_v15  ;;  %v2074_v49 = vld [vmem:[#allocation8 + $0xb0] ss:$8 sps:$4 sm:$0xff]  }
  0xb6   :  { %1133 = vmatprep.subr.bf16.mxu1 %v2028_v16 }
  0xb8   :  { %842 = vmatpush2.bf16.msra.mxu0 %v1981_v50  ;;  %v223_v50 = vlaneseq }
  0xb9   :  { %843 = vmatprep.subr.bf16.mxu0 %v1989_v51  ;;  %1134 = vmatpush2.bf16.msra.mxu1 %v2026_v17 }
  0xba   :  { %1135 = vmatprep.subr.bf16.mxu1 %v2031_v18 }
  0xbc   :  { %844 = vmatpush2.bf16.msra.mxu0 %v1987_v52  ;;  %v224_v52 = vshrl.u32 %v223_v50, 7 }
  0xbd   :  { %1136 = vmatpush2.bf16.msra.mxu1 %v2029_v19  ;;  %1362 = vmatprep.subr.bf16.mxu0 %v2040_v25 }
  0xbe   :  { %1137 = vmatprep.subr.bf16.mxu1 %v2034_v20  ;;  %v2330_v57 = vsub.s32 0, %v224_v52 }
  0xbf   :  { %846 = vmatmul.mubr.bf16.vlgmr.msra.gmra.mxu0 %v120_v55  ;;  %v2325_v55 = vsub.s32 1, %v224_v52 }
  0xc0   :  { %1363 = vmatpush1.bf16.msra.mxu0 %v2038_v24  ;;  %v226_v61 = vrot.slane %v221_v56, %v2330_v57 }
  0xc1   :  { %1138 = vmatpush2.bf16.msra.mxu1 %v2032_v21  ;;  %1364 = vmatprep.subr.bf16.mxu0 %v2043_v26  ;;  %v230_v60 = vrot.slane %v221_v56, %v2325_v55 }
  0xc2   :  { %1139 = vmatprep.subr.bf16.mxu1 %v2037_v22 }
  0xc4   :  { %1365 = vmatpush1.bf16.msra.mxu0 %v2041_v27 }
  0xc5   :  { %1140 = vmatpush2.bf16.msra.mxu1 %v2035_v23  ;;  %1366 = vmatprep.subr.bf16.mxu0 %v2046_v28 }
  0xc8   :  { %1367 = vmatpush1.bf16.msra.mxu0 %v2044_v29 }
  0xc9   :  { %1368 = vmatprep.subr.bf16.mxu0 %v2049_v30 }
  0xcc   :  { %1369 = vmatpush1.bf16.msra.mxu0 %v2047_v31  ;;  %v2079_v31 = vld [vmem:[#allocation8 + $0xa4] ss:$8 sps:$4 sm:$0xff]  }
  0xcd   :  { %1370 = vmatprep.subr.bf16.mxu0 %v2052_v32  ;;  %v2077_v32 = vld [vmem:[#allocation8 + $0xa0] ss:$8 sps:$4 sm:$0xff]  }
  0xd0   :  { %1371 = vmatpush1.bf16.msra.mxu0 %v2050_v33  ;;  %v2082_v33 = vld [vmem:[#allocation8 + $0x94] ss:$8 sps:$4 sm:$0xff]  }
  0xd1   :  { %1372 = vmatprep.subr.bf16.mxu0 %v2055_v34  ;;  %v2080_v34 = vld [vmem:[#allocation8 + $0x90] ss:$8 sps:$4 sm:$0xff]  }
  0xd4   :  { %1373 = vmatpush1.bf16.msra.mxu0 %v2053_v35  ;;  %v2085_v35 = vld [vmem:[#allocation8 + $0x84] ss:$8 sps:$4 sm:$0xff]  }
  0xd5   :  { %1374 = vmatprep.subr.bf16.mxu0 %v2058_v36  ;;  %v2083_v36 = vld [vmem:[#allocation8 + $0x80] ss:$8 sps:$4 sm:$0xff]  }
  0xd8   :  { %1375 = vmatpush1.bf16.msra.mxu0 %v2056_v37  ;;  %v2086_v37 = vld [vmem:[#allocation10 + $0x78] sm:$0xff]  }
  0xd9   :  { %1376 = vmatprep.subr.bf16.mxu0 %v2061_v38  ;;  %v2087_v38 = vld [vmem:[#allocation10 + $0x38] sm:$0xff]   ;;  %1808 = vmatprep.subr.bf16.mxu1 %v2086_v37 }
  0xdc   :  { %1377 = vmatpush1.bf16.msra.mxu0 %v2059_v39  ;;  %v2088_v39 = vld [vmem:[#allocation10 + $0x70] sm:$0xff]  }
  0xdd   :  { %1378 = vmatprep.subr.bf16.mxu0 %v2064_v40  ;;  %v2089_v40 = vld [vmem:[#allocation10 + $0x30] sm:$0xff]  }
  0xe0   :  { %1379 = vmatpush2.bf16.msra.mxu0 %v2062_v41  ;;  %v2090_v41 = vld [vmem:[#allocation10 + $0x68] sm:$0xff]  }
  0xe1   :  { %1380 = vmatprep.subr.bf16.mxu0 %v2067_v42  ;;  %v2091_v42 = vld [vmem:[#allocation10 + $0x28] sm:$0xff]  }
  0xe4   :  { %1381 = vmatpush2.bf16.msra.mxu0 %v2065_v43  ;;  %v2092_v43 = vld [vmem:[#allocation10 + $0x60] sm:$0xff]  }
  0xe5   :  { %1382 = vmatprep.subr.bf16.mxu0 %v2070_v44  ;;  %v2093_v44 = vld [vmem:[#allocation10 + $0x20] sm:$0xff]  }
  0xe8   :  { %1383 = vmatpush2.bf16.msra.mxu0 %v2068_v45  ;;  %v2094_v45 = vld [vmem:[#allocation10 + $0x58] sm:$0xff]  }
  0xe9   :  { %1384 = vmatprep.subr.bf16.mxu0 %v2073_v46  ;;  %v2095_v46 = vld [vmem:[#allocation10 + $0x18] sm:$0xff]  }
  0xec   :  { %1385 = vmatpush2.bf16.msra.mxu0 %v2071_v47  ;;  %v937_v47 = vld [vmem:[%s2357_s4] sm:$0x3] }
  0xed   :  { %1386 = vmatprep.subr.bf16.mxu0 %v2076_v48  ;;  %v942_v50 = vrot.slane %v937_v47, %v2330_v57 }
  0xf0   :  { %1387 = vmatpush2.bf16.msra.mxu0 %v2074_v49  ;;  %v946_v49 = vrot.slane %v937_v47, %v2325_v55 }
  0xf1   :  { %1388 = vmatprep.subr.bf16.mxu0 %v2079_v31 }
  0xf4   :  { %1389 = vmatpush2.bf16.msra.mxu0 %v2077_v32 }
  0xf5   :  { %1390 = vmatprep.subr.bf16.mxu0 %v2082_v33 }
  0xf8   :  { %1391 = vmatpush2.bf16.msra.mxu0 %v2080_v34 }
  0xf9   :  { %1392 = vmatprep.subr.bf16.mxu0 %v2085_v35 }
  0xfc   :  { %1393 = vmatpush2.bf16.msra.mxu0 %v2083_v36 }
 0x13f   :  { %v761_v53 = vpop.f32.mrf.mxu0 }
 0x140   :  { %v804_v51 = vpop.f32.mrf.mxu1  ;;  %v762_v2 = vadd.f32 %v761_v53, %v226_v61 }
 0x141   :  { %v763_v58 = vpop.f32.mrf.mxu0 }
 0x142   :  { %v806_v54 = vpop.f32.mrf.mxu1  ;;  %v764_v1 = vadd.f32 %v763_v58, %v230_v60  ;;  %v805_v9 = vadd.f32 %v804_v51, %v762_v2  ;;  %v2096_v2 = vld [vmem:[#allocation10 + $0x50] sm:$0xff]  }
 0x143   :  { %v765_v62 = vpop.f32.mrf.mxu0 }
 0x144   :  { %v808_v59 = vpop.f32.mrf.mxu1  ;;  %v766_v4 = vadd.f32 %v765_v62, %v226_v61  ;;  %v807_v7 = vadd.f32 %v806_v54, %v764_v1 }
 0x145   :  { %v767_v3 = vpop.f32.mrf.mxu0 }
 0x146   :  { %v810_v63 = vpop.f32.mrf.mxu1  ;;  %v768_v8 = vadd.f32 %v767_v3, %v230_v60  ;;  %v809_v11 = vadd.f32 %v808_v59, %v766_v4  ;;  %v2097_v3 = vld [vmem:[#allocation10 + $0x10] sm:$0xff]   ;;  %v2098_v4 = vld [vmem:[#allocation10 + $0x48] sm:$0xff]  }
 0x148   :  { %v890_v0 = vpop.f32.mrf.mxu1  ;;  %v811_v16 = vadd.f32 %v810_v63, %v768_v8  ;;  %v1190_v8 = vld [vmem:[%s2359_s6] sm:$0x3] }
 0x14a   :  { %v892_v5 = vpop.f32.mrf.mxu1 }
 0x14c   :  { %v894_v14 = vpop.f32.mrf.mxu1 }
 0x14e   :  { %v896_v23 = vpop.f32.mrf.mxu1 }
 0x17f   :  { %v847_v6 = vpop.f32.mrf.mxu0 }
 0x180   :  { %v848_v13 = vadd.f32 %v847_v6, %v805_v9  ;;  %v2100_v6 = vld [vmem:[#allocation10 + $0x40] sm:$0xff]  }
 0x181   :  { %v849_v10 = vpop.f32.mrf.mxu0 }
 0x182   :  { %v850_v12 = vadd.f32 %v849_v10, %v807_v7  ;;  %v891_v22 = vadd.f32 %v890_v0, %v848_v13  ;;  %v2101_v7 = vld [vmem:[#allocation10] sm:$0xff]   ;;  %v1199_v10 = vrot.slane %v1190_v8, %v2325_v55 }
 0x183   :  { %v851_v15 = vpop.f32.mrf.mxu0  ;;  %v1791_v55 = vld [vmem:[%s2361_s8] ss:$0 sm:$0xff]  ;;  %s2250_s8 = smov [#allocation11]  }
 0x184   :  { %v852_v17 = vadd.f32 %v851_v15, %v809_v11  ;;  %v893_v19 = vadd.f32 %v892_v5, %v850_v12  ;;  %v899_v28 = vmax.f32 %v891_v22, 0.0  ;;  %v2099_v5 = vld [vmem:[#allocation10 + $0x8] sm:$0xff]   ;;  %v1195_v11 = vrot.slane %v1190_v8, %v2330_v57  ;;  %s1614_s21 = sshll.u32 %s2250_s8, 4  ;;  %s1615_s21 = int_to_ptr.vmem [resolvable:$true] %s1614_s21 }
 0x185   :  { %v853_v18 = vpop.f32.mrf.mxu0  ;;  %s2210_s22 = scalar_lea.vmem %s1615_s21, 256  ;;  %p2215_p12 = scmp.lt.s32.totalorder %s1615_s21, %s1615_s21 }
 0x186   :  { %v895_v20 = vadd.f32 %v894_v14, %v852_v17  ;;  %v854_v21 = vadd.f32 %v853_v18, %v811_v16  ;;  %v900_v26 = vmax.f32 %v893_v19, 0.0  ;;  %p2211_p11 = scmp.ne.s32.totalorder %s1615_s21, %s2210_s22  ;;  %p2216_p13 = scmp.lt.s32.totalorder %s2210_s22, %s2210_s22 }
 0x188   :  { %v897_v24 = vadd.f32 %v896_v23, %v854_v21  ;;  %v901_v25 = vmax.f32 %v895_v20, 0.0  ;;  %p2217_p0 = por %p2216_p13, %p2215_p12 }
 0x18a   :  { %v902_v27 = vmax.f32 %v897_v24, 0.0  ;;  %v903_v30 = vpack.c.bf16 %v901_v25, %v899_v28  ;;  %p2218_p1 = pnand %p2217_p0, %p2211_p11 }
 0x18c   :  { %v904_v29 = vpack.c.bf16 %v902_v27, %v900_v26 }
 0x18e   :  { %1141 = vmatprep.mubr.bf16.mxu1 %v904_v29 }
 0x18f   :  { %1142 = vmatmul.mubr.bf16.vlgmr.msra.gmra.mxu1 %v903_v30 }
 0x190   :  { %1809 = vmatpush3.bf16.msra.mxu1 %v2087_v38 }
 0x191   :  { %1810 = vmatprep.subr.bf16.mxu1 %v2088_v39 }
 0x194   :  { %1811 = vmatpush3.bf16.msra.mxu1 %v2089_v40 }
 0x195   :  { %1812 = vmatprep.subr.bf16.mxu1 %v2090_v41 }
 0x198   :  { %1813 = vmatpush3.bf16.msra.mxu1 %v2091_v42 }
 0x199   :  { %1814 = vmatprep.subr.bf16.mxu1 %v2092_v43 }
 0x19c   :  { %1815 = vmatpush3.bf16.msra.mxu1 %v2093_v44 }
 0x19d   :  { %1816 = vmatprep.subr.bf16.mxu1 %v2094_v45 }
 0x1a0   :  { %1817 = vmatpush3.bf16.msra.mxu1 %v2095_v46 }
 0x1a1   :  { %1818 = vmatprep.subr.bf16.mxu1 %v2096_v2 }
 0x1a4   :  { %1819 = vmatpush3.bf16.msra.mxu1 %v2097_v3 }
 0x1a5   :  { %1820 = vmatprep.subr.bf16.mxu1 %v2098_v4 }
 0x1a8   :  { %1821 = vmatpush3.bf16.msra.mxu1 %v2099_v5 }
 0x1a9   :  { %1822 = vmatprep.subr.bf16.mxu1 %v2100_v6 }
 0x1ac   :  { %1823 = vmatpush3.bf16.msra.mxu1 %v2101_v7 }
 0x24f   :  { %v1143_v48 = vpop.f32.mrf.mxu1 }
 0x250   :  { %v1144_v56 = vadd.f32 %v1143_v48, %v942_v50 }
 0x251   :  { %v1145_v51 = vpop.f32.mrf.mxu1 }
 0x252   :  { %v1146_v53 = vadd.f32 %v1145_v51, %v946_v49  ;;  %v1152_v63 = vmax.f32 %v1144_v56, 0.0 }
 0x253   :  { %v1147_v52 = vpop.f32.mrf.mxu1 }
 0x254   :  { %v1148_v54 = vadd.f32 %v1147_v52, %v942_v50  ;;  %v1153_v61 = vmax.f32 %v1146_v53, 0.0 }
 0x255   :  { %v1149_v58 = vpop.f32.mrf.mxu1 }
 0x256   :  { %v1150_v59 = vadd.f32 %v1149_v58, %v946_v49  ;;  %v1154_v60 = vmax.f32 %v1148_v54, 0.0 }
 0x258   :  { %v1155_v62 = vmax.f32 %v1150_v59, 0.0  ;;  %v1156_v1 = vpack.c.bf16 %v1154_v60, %v1152_v63 }
 0x25a   :  { %v1157_v0 = vpack.c.bf16 %v1155_v62, %v1153_v61 }
 0x25c   :  { %1394 = vmatprep.mubr.bf16.mxu0 %v1157_v0 }
 0x25d   :  { %1395 = vmatmul.mubr.bf16.vlgmr.msra.gmra.mxu0 %v1156_v1 }
 0x31d   :  { %v1396_v9 = vpop.f32.mrf.mxu0 }
 0x31e   :  { %v1397_v16 = vadd.f32 %v1396_v9, %v1195_v11 }
 0x31f   :  { %v1398_v12 = vpop.f32.mrf.mxu0 }
 0x320   :  { %v1399_v14 = vadd.f32 %v1398_v12, %v1199_v10  ;;  %v1405_v22 = vmax.f32 %v1397_v16, 0.0 }
 0x321   :  { %v1400_v13 = vpop.f32.mrf.mxu0 }
 0x322   :  { %v1401_v15 = vadd.f32 %v1400_v13, %v1195_v11  ;;  %v1406_v20 = vmax.f32 %v1399_v14, 0.0 }
 0x323   :  { %v1402_v17 = vpop.f32.mrf.mxu0 }
 0x324   :  { %v1403_v18 = vadd.f32 %v1402_v17, %v1199_v10  ;;  %v1407_v19 = vmax.f32 %v1401_v15, 0.0 }
 0x326   :  { %v1408_v21 = vmax.f32 %v1403_v18, 0.0  ;;  %v1409_v24 = vpack.c.bf16 %v1407_v19, %v1405_v22 }
 0x328   :  { %v1410_v23 = vpack.c.bf16 %v1408_v21, %v1406_v20 }
 0x32a   :  { %1578 = vmatprep.mubr.bf16.mxu1 %v1410_v23 }
 0x32b   :  { %1579 = vmatmul.mubr.bf16.vlgmr.msra.gmra.mxu1 %v1409_v24 }
 0x3eb   :  { %v1824_v25 = vpop.f32.mrf.mxu1 }
 0x3ed   :  { %v1825_v26 = vpop.f32.mrf.mxu1 }
 0x3ee   :  { %v1826_v57 = vadd.f32 %v1825_v26, %v1824_v25 }
 0x3ef   :  { %v1827_v27 = vpop.f32.mrf.mxu1 }
 0x3f0   :  { %v1581_v28 = vadd.f32 %v1826_v57, %v1791_v55 }
 0x3f1   :  { %v1828_v29 = vpop.f32.mrf.mxu1 }
 0x3f2   :  { %v1829_v30 = vadd.f32 %v1828_v29, %v1827_v27  ;;  %1587 = vmax.xlane.f32.xlu0 %v1581_v28 }
 0x3f4   :  { %v1584_v31 = vadd.f32 %v1829_v30, %v1791_v55 }
 0x3f6   :  { %1589 = vmax.xlane.f32.xlu0 %v1584_v31 }
 0x47b   :  { %v1588_v32 = vpop.xlane.xlu0 %1587 }
 0x47c   :  { %v1591_v33 = vsub.f32 %v1581_v28, %v1588_v32 }
 0x47e   :  { %v1593_v34 = vmul.f32 1.442695, %v1591_v33 }
 0x47f   :  { %v1590_v35 = vpop.xlane.xlu0 %1589 }
 0x480   :  { %v1592_v36 = vsub.f32 %v1584_v31, %v1590_v35  ;;  %2102 = vpow2.f32 %v1593_v34 }
 0x482   :  { %v1595_v37 = vmul.f32 1.442695, %v1592_v36 }
 0x484   :  { %2104 = vpow2.f32 %v1595_v37 }
 0x48d   :  { %v2103_v38 = vpop.eup %2102 }
 0x48e   :  { %1597 = vadd.xlane.f32.xlu1 %v2103_v38 }
 0x491   :  { %v2105_v39 = vpop.eup %2104 }
 0x492   :  { %1599 = vadd.xlane.f32.xlu1 %v2105_v39 }
 0x517   :  { %v1598_v40 = vpop.xlane.xlu1 %1597 }
 0x518   :  { %2106 = vlog2.f32 %v1598_v40 }
 0x51b   :  { %v1600_v41 = vpop.xlane.xlu1 %1599 }
 0x51c   :  { %2108 = vlog2.f32 %v1600_v41 }
 0x525   :  { %v2107_v42 = vpop.eup %2106 }
 0x526   :  { %v1602_v43 = vmul.f32 0.6931472, %v2107_v42 }
 0x528   :  { %v1605_v44 = vsub.f32 %v1591_v33, %v1602_v43 }
 0x529   :  { %v2109_v45 = vpop.eup %2108 }
 0x52a   :  { %v1604_v46 = vmul.f32 0.6931472, %v2109_v45  ;;  %1607 = vst [vmem:[#allocation11] sm:$0xff] %v1605_v44 }
 0x52c   :  { %v1606_v47 = vsub.f32 %v1592_v36, %v1604_v46 }
 0x52e   :  { %1608 = vst [vmem:[#allocation11 + $0x8] sm:$0xff] %v1606_v47 }
 0x52f   :  { %2221 = shalt.err (!%p2218_p1)
}
 0x530   :  { %1620 = dma.vmem_to_hbm [thread:$0]  %s1615_s21, 256, %s2362_s9, [#allocation4], %s2239_s12, %s2239_s12, %s2240_s13  }
 0x531   :  { %2236 = dma.done.wait [#allocation4], 256  }
 0x532   :  { %2237 = vsyncadd [#allocation4], 4294967040 }
 0x533   :  { %1624 = vsyncpa [#allocation3], 1 }
 0x534   :  { %1625 = vsyncpa [#allocation6], 1 }
 0x535   :  { %1626 = vsyncpa [#allocation9], 1 }
 0x536   :  { %1627 = vsyncpa [#allocation4], 1 }

</bundles_post_ra>
